<compile_context>
chip_gen: v6e
topology: v6e:2x2x1
jax: 0.10.0
libtpu: 0.0.40
codegen_flags: <defaults>
</compile_context>

<pallas_src>
import functools

import jax
import jax.numpy as jnp
from jax.experimental import pallas as pl
from jax.experimental.pallas import tpu as pltpu

_LANES = 128
_SUBLANES = 8
# ~1 MiB per input block -> 2 inputs x 2 pipeline buffers = 4 MiB of input
# buffering, comfortably inside v7x's smaller (64 MiB physical) VMEM.
_TARGET_BLOCK_BYTES = 1 << 20


def _rec_loss_kernel(mode, eps2, rows, block_rows, aligned,
                     pred_ref, lab_ref, out_ref, acc_ref):
    """One grid step: fold a (block_rows, 128) tile into the (8, 128) accumulator.

    grid = (num_splits, nb_per_split); axis 0 is 'parallel' (megacore split on
    v7x), axis 1 is the sequential reduction.  out_ref is this split's (8, 128)
    partial-sum block; acc_ref is a single-vreg accumulator scratch.
    """
    c = pl.program_id(0)
    i = pl.program_id(1)
    nb_per_split = pl.num_programs(1)

    @pl.when(i == 0)
    def _init():
        acc_ref[...] = jnp.zeros_like(acc_ref)

    diff = pred_ref[...].astype(jnp.float32) - lab_ref[...].astype(jnp.float32)
    if mode == "mse":
        val = diff * diff
    elif mode == "mae":
        val = jnp.abs(diff)
    else:  # "charb" (mode validated in the wrapper)
        val = jnp.sqrt(diff * diff + eps2)

    def _fold(x):
        # (block_rows, 128) -> (8, 128): groups whole (8,128) tiles, pure VALU adds.
        return x.reshape(block_rows // _SUBLANES, _SUBLANES, _LANES).sum(axis=0)

    if aligned:
        # Every block is fully in range: no masking anywhere in the hot path.
        acc_ref[...] += _fold(val)
    else:
        blk = c * nb_per_split + i            # global row-block index (row units, int32-safe)
        valid_rows = rows - blk * block_rows  # rows of this block inside the array

        @pl.when(valid_rows >= block_rows)
        def _full():
            acc_ref[...] += _fold(val)

        @pl.when(valid_rows < block_rows)     # ragged tail / clamped duplicate block only
        def _ragged():
            row = jax.lax.broadcasted_iota(jnp.int32, val.shape, 0)
            acc_ref[...] += _fold(jnp.where(row < valid_rows, val, 0.0))

    @pl.when(i == nb_per_split - 1)
    def _finalize():
        out_ref[...] = acc_ref[...]


def rec_loss(pred, label, mode="mae", weight=1.0, eps=1e-6):
    """Pallas-TPU equivalent of RecLoss(mode, weight)(pred, label)."""
    if mode not in ("mae", "mse", "charb"):
        raise ValueError("unknown rec loss mode")
    assert pred.shape == label.shape
    n = int(pred.size)
    eps2 = float(eps) ** 2

    # Flatten in native dtype; pad only to the minimal 8x128 granule (no-op when
    # n is already aligned, which is the common case for image tensors).
    granule = _SUBLANES * _LANES
    pad_to = -(-n // granule) * granule
    pad = pad_to - n
    pred_f = pred.reshape(-1)
    lab_f = label.reshape(-1)
    if pad:
        pred_f = jnp.pad(pred_f, (0, pad))
        lab_f = jnp.pad(lab_f, (0, pad))
    rows = pad_to // _LANES
    pred_2d = pred_f.reshape(rows, _LANES)
    lab_2d = lab_f.reshape(rows, _LANES)

    # Block size: ~1 MiB per input block in the input's native dtype.
    itemsize = max(jnp.dtype(pred.dtype).itemsize, jnp.dtype(label.dtype).itemsize)
    block_rows = _TARGET_BLOCK_BYTES // (_LANES * itemsize)
    block_rows = max(_SUBLANES, (min(block_rows, rows) // _SUBLANES) * _SUBLANES)

    nb = -(-rows // block_rows)             # total row blocks
    num_splits = 2 if nb >= 2 else 1        # feed both TensorCores on v7x
    nb_per_split = -(-nb // num_splits)
    aligned = (rows % block_rows == 0) and (nb % num_splits == 0)

    if aligned:
        in_idx = lambda c, i: (c * nb_per_split + i, 0)
    else:
        # Clamp out-of-range duplicate blocks (odd nb); kernel masks them out.
        in_idx = lambda c, i: (jnp.minimum(c * nb_per_split + i, nb - 1), 0)

    kernel = functools.partial(_rec_loss_kernel, mode, eps2, rows, block_rows, aligned)

    partials = pl.pallas_call(
        kernel,
        out_shape=jax.ShapeDtypeStruct((num_splits * _SUBLANES, _LANES), jnp.float32),
        grid_spec=pltpu.PrefetchScalarGridSpec(
            num_scalar_prefetch=0,
            grid=(num_splits, nb_per_split),
            in_specs=[
                pl.BlockSpec((block_rows, _LANES), in_idx),
                pl.BlockSpec((block_rows, _LANES), in_idx),
            ],
            out_specs=pl.BlockSpec((_SUBLANES, _LANES), lambda c, i: (c, 0)),
            scratch_shapes=[pltpu.VMEM((_SUBLANES, _LANES), jnp.float32)],
        ),
        compiler_params=pltpu.CompilerParams(
            dimension_semantics=("parallel", "arbitrary"),
            vmem_limit_bytes=32 * 1024 * 1024,
        ),
    )(pred_2d, lab_2d)

    total = jnp.sum(partials)
    if mode == "charb" and pad:
        # Zero-padded tail elements each contributed sqrt(0 + eps^2); remove exactly.
        total = total - jnp.float32(pad) * jnp.sqrt(jnp.float32(eps2))
    return (total / jnp.float32(n)) * jnp.float32(weight)


def _ref_loss(pred, label, mode, weight, eps=1e-6):
    d = pred.astype(jnp.float32) - label.astype(jnp.float32)
    if mode == "mse":
        v = d * d
    elif mode == "mae":
        v = jnp.abs(d)
    else:
        v = jnp.sqrt(d * d + eps ** 2)
    return jnp.mean(v) * weight


if __name__ == "__main__":
    key = jax.random.PRNGKey(0)
    k1, k2 = jax.random.split(key)

    ok = True
    # Small NCHW shape consistent with an image-reconstruction loss, plus a
    # larger shape that exercises the multi-block / megacore-split / ragged path.
    for shape in ((2, 4, 16, 16), (2, 4, 272, 272)):
        pred = jax.random.normal(k1, shape, dtype=jnp.float32)
        label = jax.random.normal(k2, shape, dtype=jnp.float32)
        for mode in ("mae", "mse", "charb"):
            out = jax.block_until_ready(rec_loss(pred, label, mode=mode, weight=1.0))
            ref = _ref_loss(pred, label, mode, 1.0)
            if not jnp.allclose(out, ref, rtol=1e-4, atol=1e-6):
                ok = False
                print(f"MISMATCH shape={shape} mode={mode}: kernel={out} ref={ref}")

    if ok:
        print("KERNEL_OK")
</pallas_src>

<mosaic_0001>
module attributes {stable_mosaic.version = 11 : i64} {
  func.func @_rec_loss_kernel(%arg0: i32, %arg1: i32, %arg2: memref<16x128xf32, #tpu.memory_space<vmem>>, %arg3: memref<16x128xf32, #tpu.memory_space<vmem>>, %arg4: memref<8x128xf32, #tpu.memory_space<vmem>>, %arg5: memref<8x128xf32, #tpu.memory_space<vmem>>) attributes {dimension_semantics = [#tpu.dimension_semantics<parallel>, #tpu.dimension_semantics<arbitrary>], iteration_bounds = array<i64: 1, 1>, scalar_prefetch = 0 : i64, scratch_operands = 1 : i64, tpu.core_type = #tpu.core_type<tc>, window_params = [{transform_indices = @transform_0, window_bounds = array<i64: 16, 128>}, {transform_indices = @transform_1, window_bounds = array<i64: 16, 128>}, {transform_indices = @transform_2, window_bounds = array<i64: 8, 128>}]} {
    %c0_i32 = arith.constant 0 : i32
    %0 = arith.cmpi eq, %arg1, %c0_i32 : i32
    %1 = arith.extui %0 : i1 to i32
    %c0_i32_0 = arith.constant 0 : i32
    %2 = arith.cmpi ne, %1, %c0_i32_0 : i32
    scf.if %2 {
      %cst_10 = arith.constant 0.000000e+00 : f32
      %15 = vector.broadcast %cst_10 : f32 to vector<8x128xf32>
      %c0_11 = arith.constant 0 : index
      %c0_12 = arith.constant 0 : index
      %16 = vector.load %arg5[%c0_11, %c0_12] : memref<8x128xf32, #tpu.memory_space<vmem>>, vector<8x128xf32>
      tpu.vector_store %arg5[%c0_11, %c0_12], %15 {strides = array<i32>} : memref<8x128xf32, #tpu.memory_space<vmem>>, vector<8x128xf32>,
    } else {
    }
    %c0 = arith.constant 0 : index
    %c0_1 = arith.constant 0 : index
    %3 = vector.load %arg2[%c0, %c0_1] : memref<16x128xf32, #tpu.memory_space<vmem>>, vector<16x128xf32>
    %c0_2 = arith.constant 0 : index
    %c0_3 = arith.constant 0 : index
    %4 = vector.load %arg3[%c0_2, %c0_3] : memref<16x128xf32, #tpu.memory_space<vmem>>, vector<16x128xf32>
    %5 = arith.subf %3, %4 : vector<16x128xf32>
    %6 = math.absf %5 : vector<16x128xf32>
    %c0_4 = arith.constant 0 : index
    %c0_5 = arith.constant 0 : index
    %7 = vector.load %arg5[%c0_4, %c0_5] : memref<8x128xf32, #tpu.memory_space<vmem>>, vector<8x128xf32>
    %8 = vector.shape_cast %6 : vector<16x128xf32> to vector<2x8x128xf32>
    %cst = arith.constant dense<0.000000e+00> : vector<8x128xf32>
    %9 = vector.multi_reduction <add>, %8, %cst [0] : vector<2x8x128xf32> to vector<8x128xf32>
    %10 = arith.addf %7, %9 : vector<8x128xf32>
    %c0_6 = arith.constant 0 : index
    %c0_7 = arith.constant 0 : index
    %11 = vector.load %arg5[%c0_6, %c0_7] : memref<8x128xf32, #tpu.memory_space<vmem>>, vector<8x128xf32>
    tpu.vector_store %arg5[%c0_6, %c0_7], %10 {strides = array<i32>} : memref<8x128xf32, #tpu.memory_space<vmem>>, vector<8x128xf32>,
    %c0_i32_8 = arith.constant 0 : i32
    %12 = arith.cmpi eq, %arg1, %c0_i32_8 : i32
    %13 = arith.extui %12 : i1 to i32
    %c0_i32_9 = arith.constant 0 : i32
    %14 = arith.cmpi ne, %13, %c0_i32_9 : i32
    scf.if %14 {
      %c0_10 = arith.constant 0 : index
      %c0_11 = arith.constant 0 : index
      %15 = vector.load %arg5[%c0_10, %c0_11] : memref<8x128xf32, #tpu.memory_space<vmem>>, vector<8x128xf32>
      %c0_12 = arith.constant 0 : index
      %c0_13 = arith.constant 0 : index
      %16 = vector.load %arg4[%c0_12, %c0_13] : memref<8x128xf32, #tpu.memory_space<vmem>>, vector<8x128xf32>
      tpu.vector_store %arg4[%c0_12, %c0_13], %15 {strides = array<i32>} : memref<8x128xf32, #tpu.memory_space<vmem>>, vector<8x128xf32>,
    } else {
    }
    return
  }
  func.func @transform_0(%arg0: i32, %arg1: i32) -> (i32, i32) {
    %c1_i32 = arith.constant 1 : i32
    %0 = arith.muli %arg0, %c1_i32 : i32
    %1 = arith.addi %0, %arg1 : i32
    %c0_i32 = arith.constant 0 : i32
    %c0_i32_0 = arith.constant 0 : i32
    return %1, %c0_i32 : i32, i32
  }
  func.func @transform_1(%arg0: i32, %arg1: i32) -> (i32, i32) {
    %c1_i32 = arith.constant 1 : i32
    %0 = arith.muli %arg0, %c1_i32 : i32
    %1 = arith.addi %0, %arg1 : i32
    %c0_i32 = arith.constant 0 : i32
    %c0_i32_0 = arith.constant 0 : i32
    return %1, %c0_i32 : i32, i32
  }
  func.func @transform_2(%arg0: i32, %arg1: i32) -> (i32, i32) {
    %c0_i32 = arith.constant 0 : i32
    %c0_i32_0 = arith.constant 0 : i32
    return %arg0, %c0_i32 : i32, i32
  }
}

</mosaic_0001>

<bundles_post_ra>
// kernel: tpu_custom_call.1
= control target key start
LH: loop header
LB: loop body
LE: loop exit
PB: predicated region body
PF: predicated region fallthrough
CT: control target
= control target key end

     0   :  { %7 = vsyncpa [#allocation4], 0  ;;  %s190_s0 = inlined_call_operand.hbm [shape: f32[16,128], index: 0, kind: input, shape index: {}]   ;;  %s191_s1 = inlined_call_operand.hbm [shape: f32[16,128], index: 1, kind: input, shape index: {}]   ;;  %s192_s2 = inlined_call_operand.hbm [shape: f32[8,128], index: 2, kind: output, shape index: {}]  }
   0x1   :  { %8 = vsyncpa [#allocation7], 0 }
   0x2   :  { %9 = vsyncpa [#allocation5], 0  ;;  %s161_s9 = smov [#allocation3]  }
   0x3   :  { %s19_s10 = sshll.u32 %s161_s9, 4  ;;  %s20_s10 = int_to_ptr.vmem [resolvable:$true] %s19_s10 }
   0x4   :  { %s103_s11 = scalar_lea.vmem %s20_s10, 256  ;;  %p108_p1 = scmp.lt.s32.totalorder %s20_s10, %s20_s10 }
   0x5   :  { %p104_p0 = scmp.ne.s32.totalorder %s20_s10, %s103_s11  ;;  %p109_p2 = scmp.lt.s32.totalorder %s103_s11, %s103_s11 }
   0x7   :  { %p110_p3 = por %p109_p2, %p108_p1 }
   0x9   :  { %p111_p4 = pnand %p110_p3, %p104_p0 }
   0xb   :  { %114 = shalt.err (!%p111_p4)
}
   0xc   :  { %s162_s12 = smov 128   ;;  %s163_s13 = smov 8  }
   0xd   :  { %25 = dma.hbm_to_vmem [thread:$0]  %s190_s0, 256, %s20_s10, [#allocation4], %s162_s12, %s162_s12, %s163_s13  }
   0xe   :  { %s164_s16 = smov [#allocation6]  }
   0xf   :  { %s35_s17 = sshll.u32 %s164_s16, 4  ;;  %s36_s17 = int_to_ptr.vmem [resolvable:$true] %s35_s17 }
  0x10   :  { %s123_s18 = scalar_lea.vmem %s36_s17, 256  ;;  %p128_p6 = scmp.lt.s32.totalorder %s36_s17, %s36_s17 }
  0x11   :  { %p124_p5 = scmp.ne.s32.totalorder %s36_s17, %s123_s18  ;;  %p129_p7 = scmp.lt.s32.totalorder %s123_s18, %s123_s18 }
  0x13   :  { %p130_p8 = por %p129_p7, %p128_p6 }
  0x15   :  { %p131_p9 = pnand %p130_p8, %p124_p5 }
  0x17   :  { %134 = shalt.err (!%p131_p9)
}
  0x18   :  { %41 = dma.hbm_to_vmem [thread:$0]  %s191_s1, 256, %s36_s17, [#allocation7], %s162_s12, %s162_s12, %s163_s13  }
  0x19   :  { %155 = dma.done.wait [#allocation4], 256  }
  0x1a   :  { %156 = vsyncadd [#allocation4], 4294967040 }
  0x1b   :  { %157 = dma.done.wait [#allocation7], 256  }
  0x1c   :  { %158 = vsyncadd [#allocation7], 4294967040  ;;  %v57_v0 = vld [vmem:[#allocation3] sm:$0xff]  ;;  %v58_v1 = vld [vmem:[#allocation3 + $0x8] sm:$0xff]  ;;  %s165_s0 = smov [#allocation8]  }
  0x1d   :  { %v59_v2 = vld [vmem:[#allocation6] sm:$0xff]  ;;  %v60_v3 = vld [vmem:[#allocation6 + $0x8] sm:$0xff]  ;;  %s80_s21 = sshll.u32 %s165_s0, 4  ;;  %s81_s21 = int_to_ptr.vmem [resolvable:$true] %s80_s21 }
  0x1e   :  { %v61_v4 = vsub.f32 %v57_v0, %v59_v2  ;;  %v62_v5 = vsub.f32 %v58_v1, %v60_v3  ;;  %s135_s22 = scalar_lea.vmem %s81_s21, 128  ;;  %p140_p11 = scmp.lt.s32.totalorder %s81_s21, %s81_s21 }
  0x1f   :  { %p136_p10 = scmp.ne.s32.totalorder %s81_s21, %s135_s22  ;;  %p141_p12 = scmp.lt.s32.totalorder %s135_s22, %s135_s22 }
  0x20   :  { %v63_v6 = vand.u32 2147483647, %v61_v4  ;;  %v64_v7 = vand.u32 2147483647, %v62_v5 }
  0x21   :  { %p142_p13 = por %p141_p12, %p140_p11 }
  0x22   :  { %v66_v8 = vadd.f32 %v64_v7, %v63_v6 }
  0x23   :  { %p143_p0 = pnand %p142_p13, %p136_p10 }
  0x24   :  { %73 = vst [vmem:[#allocation8] sm:$0xff] %v66_v8 }
  0x25   :  { %146 = shalt.err (!%p143_p0)
}
  0x26   :  { %83 = dma.vmem_to_hbm [thread:$0]  %s81_s21, 128, %s192_s2, [#allocation5]  }
  0x27   :  { %159 = dma.done.wait [#allocation5], 128  }
  0x28   :  { %160 = vsyncadd [#allocation5], 4294967168 }
  0x29   :  { %87 = vsyncpa [#allocation4], 1 }
  0x2a   :  { %88 = vsyncpa [#allocation7], 1 }
  0x2b   :  { %89 = vsyncpa [#allocation5], 1 }

</bundles_post_ra>
